<compile_context>
chip_gen: v5e
topology: v5e:2x2
jax: 0.10.0
libtpu: 0.0.40
codegen_flags: <defaults>
</compile_context>

<pallas_src>
import functools

import jax
import jax.numpy as jnp
from jax.experimental import pallas as pl
from jax.experimental.pallas import tpu as pltpu


H1 = 256     # first hidden dim
H2 = 128     # second hidden dim
IN_DIM = 128  # scaled_out.view(-1, 128) feeds the MLP, so this is fixed


def _round_up(x, m):
    return (x + m - 1) // m * m


def _layernorm(h, gamma, beta, eps=1e-5):
    # var = E[h^2] - mu^2 : the two lane-reductions are independent, so the
    # XLUs can overlap them.  h is sigmoid-bounded upstream -> stable here.
    mu = jnp.mean(h, axis=-1, keepdims=True)
    ms = jnp.mean(h * h, axis=-1, keepdims=True)
    var = ms - mu * mu
    return (h - mu) * jax.lax.rsqrt(var + eps) * gamma + beta


def critic_kernel(xg_ref, wa_ref, wb_ref, p_ref, out_ref, *, k_pad):
    # ---- small-vector slab rows (read once, lane-slice) --------------------
    row0 = p_ref[0:1, :]                     # [bl1 | bl2 | ...]
    row1 = p_ref[1:2, :]                     # [g1  | g2  | ...]
    row2 = p_ref[2:3, :]                     # [be1 | be2 | ...]
    row3 = p_ref[3:4, :]                     # [Wl3 | bl3 | .. | b ]

    # ---- fused gating: x1@W1 + x2@W2 + x3@W3 + act@W4 in ONE bf16 matmul ---
    xg = xg_ref[...].astype(jnp.bfloat16)            # (1, k_pad)
    wg = wa_ref[0:k_pad, :]                           # (k_pad, 128) bf16
    wl2 = wa_ref[k_pad:k_pad + H1, :]                 # (256, 128)  bf16
    s = jnp.dot(xg, wg, preferred_element_type=jnp.float32)
    s = s + row3[:, H1:H1 + 128]                      # bias b (f32)
    s = jax.nn.sigmoid(s)
    s = jnp.clip(s, 1e-5, 1.0 - 1e-5)                 # (1, 128) f32

    # ---- MLP: Linear(128,256) + LN + ReLU ----------------------------------
    h = jnp.dot(s.astype(jnp.bfloat16), wb_ref[...],
                preferred_element_type=jnp.float32)
    h = h + row0[:, 0:H1]                              # bl1
    h = _layernorm(h, row1[:, 0:H1], row2[:, 0:H1])    # g1, be1
    h = jnp.maximum(h, 0.0)                            # (1, 256) f32

    # ---- Linear(256,128) + LN + ReLU ---------------------------------------
    h = jnp.dot(h.astype(jnp.bfloat16), wl2,
                preferred_element_type=jnp.float32)
    h = h + row0[:, H1:H1 + H2]                        # bl2
    h = _layernorm(h, row1[:, H1:H1 + H2], row2[:, H1:H1 + H2])
    h = jnp.maximum(h, 0.0)                            # (1, 128) f32

    # ---- Linear(128,1): elementwise mul + lane reduce (avoid N=1 matmul) ---
    o = jnp.sum(h * row3[:, 0:H2], axis=-1, keepdims=True) + row3[:, H2:H2 + 1]

    # .mean() over a (1,1) tensor is the identity -> write the (1,1) block.
    out_ref[...] = o


@jax.jit
def critic_forward(x1, x2, x3, action, packed):
    """Jitted Pallas wrapper. Returns a scalar (shape ()) float32."""
    wa, wb, p = packed["WA"], packed["WB"], packed["P"]
    k_pad = wa.shape[0] - H1

    act = jnp.reshape(action, (1, 1)).astype(jnp.float32)
    xg = jnp.concatenate(
        [x1.astype(jnp.float32), x2.astype(jnp.float32),
         x3.astype(jnp.float32), act], axis=1)
    xg = jnp.pad(xg, ((0, 0), (0, k_pad - xg.shape[1])))   # zero-pad K

    kernel = functools.partial(critic_kernel, k_pad=k_pad)
    out = pl.pallas_call(
        kernel,
        out_shape=jax.ShapeDtypeStruct((1, 1), jnp.float32),
        in_specs=[pl.BlockSpec(memory_space=pltpu.MemorySpace.VMEM)] * 4,
        out_specs=pl.BlockSpec(memory_space=pltpu.MemorySpace.VMEM),
    )(xg, wa, wb, p)
    return out[0, 0]


def init_params(key, embedding_length, batch_size):
    """Deterministic synthetic init mirroring the PyTorch __init__ shapes."""
    ks = jax.random.split(key, 12)
    u = lambda k, shp, lo, hi: jax.random.uniform(k, shp, jnp.float32, lo, hi)

    params = {
        "W1": u(ks[0], (embedding_length, 128), -0.5, 0.5),
        "W2": u(ks[1], (batch_size, 128), -0.5, 0.5),
        "W3": u(ks[2], (batch_size, 128), -0.5, 0.5),
        "W4": u(ks[3], (1, 128), -0.5, 0.5),
        "b":  u(ks[4], (1, 128), -0.5, 0.5),
        # Linear(128, 256) -- PyTorch default init range 1/sqrt(fan_in)
        "Wl1": u(ks[5], (IN_DIM, H1), -1.0 / IN_DIM**0.5, 1.0 / IN_DIM**0.5),
        "bl1": u(ks[6], (1, H1), -1.0 / IN_DIM**0.5, 1.0 / IN_DIM**0.5),
        "g1":  jnp.ones((1, H1), jnp.float32),
        "be1": jnp.zeros((1, H1), jnp.float32),
        # Linear(256, 128)
        "Wl2": u(ks[7], (H1, H2), -1.0 / H1**0.5, 1.0 / H1**0.5),
        "bl2": u(ks[8], (1, H2), -1.0 / H1**0.5, 1.0 / H1**0.5),
        "g2":  jnp.ones((1, H2), jnp.float32),
        "be2": jnp.zeros((1, H2), jnp.float32),
        # Linear(128, 1) stored as a (1, 128) row
        "Wl3": u(ks[9], (1, H2), -1.0 / H2**0.5, 1.0 / H2**0.5),
        "bl3": u(ks[10], (1, 1), -1.0 / H2**0.5, 1.0 / H2**0.5),
    }
    return params


def pack_params(params, embedding_length, batch_size):
    """One-time packing of the parameter tensors into 3 kernel slabs."""
    E, B = embedding_length, batch_size
    k = E + 2 * B + 1                               # rows of [W1;W2;W3;W4]
    k_pad = max(128, _round_up(k, 128))

    # Gating weights (zero rows beyond k contribute nothing).
    wg = jnp.zeros((k_pad, 128), jnp.float32)
    wg = wg.at[0:E].set(params["W1"])
    wg = wg.at[E:E + B].set(params["W2"])
    wg = wg.at[E + B:E + 2 * B].set(params["W3"])
    wg = wg.at[E + 2 * B:E + 2 * B + 1].set(params["W4"])

    # Slab A: [Wg ; Wl2] -> (k_pad + 256, 128) bf16.  Slab B: Wl1 bf16.
    w_a = jnp.concatenate([wg, params["Wl2"]], axis=0).astype(jnp.bfloat16)
    w_b = params["Wl1"].astype(jnp.bfloat16)

    # Small-vector slab (f32, 4 x 384), lane-packed:
    #   row0 = [bl1 | bl2], row1 = [g1 | g2], row2 = [be1 | be2],
    #   row3 = [Wl3 | bl3 | pad | b]
    P = jnp.zeros((4, H1 + 128), jnp.float32)
    P = P.at[0, 0:H1].set(params["bl1"][0])
    P = P.at[0, H1:H1 + H2].set(params["bl2"][0])
    P = P.at[1, 0:H1].set(params["g1"][0])
    P = P.at[1, H1:H1 + H2].set(params["g2"][0])
    P = P.at[2, 0:H1].set(params["be1"][0])
    P = P.at[2, H1:H1 + H2].set(params["be2"][0])
    P = P.at[3, 0:H2].set(params["Wl3"][0])
    P = P.at[3, H2:H2 + 1].set(params["bl3"][0])
    P = P.at[3, H1:H1 + 128].set(params["b"][0])

    return {"WA": w_a, "WB": w_b, "P": P}


def critic_reference(x1, x2, x3, action, params, matmul_dtype=jnp.float32):
    """Pure-JAX reference mirroring the PyTorch math (unpacked params).

    matmul_dtype=bfloat16 reproduces the kernel's mixed-precision matmuls
    (bf16 operands, f32 accumulation) for an apples-to-apples check."""
    c = lambda a: a.astype(matmul_dtype)
    dot = lambda a, b: jnp.dot(c(a), c(b), preferred_element_type=jnp.float32)

    act = jnp.reshape(action, (1, 1)).astype(jnp.float32)
    s = jax.nn.sigmoid(
        dot(x1, params["W1"]) + dot(x2, params["W2"]) + dot(x3, params["W3"])
        + dot(act, params["W4"]) + params["b"])
    s = jnp.clip(s, 1e-5, 1.0 - 1e-5)

    def ln(h, g, b, eps=1e-5):
        mu = jnp.mean(h, -1, keepdims=True)
        var = jnp.mean((h - mu) ** 2, -1, keepdims=True)
        return (h - mu) / jnp.sqrt(var + eps) * g + b

    h = jnp.maximum(ln(dot(s, params["Wl1"]) + params["bl1"],
                       params["g1"], params["be1"]), 0.0)
    h = jnp.maximum(ln(dot(h, params["Wl2"]) + params["bl2"],
                       params["g2"], params["be2"]), 0.0)
    o = jnp.sum(h * params["Wl3"], -1, keepdims=True) + params["bl3"]
    return jnp.mean(o)


if __name__ == "__main__":
    # Small shapes consistent with the module's forward:
    embedding_length = 32   # x1 feature dim
    batch_size = 16         # ctor arg -> W2/W3 row count == x2/x3 feature dim

    key = jax.random.PRNGKey(0)
    kp, k1, k2, k3, ka = jax.random.split(key, 5)

    params = init_params(kp, embedding_length, batch_size)
    packed = pack_params(params, embedding_length, batch_size)

    x1 = jax.random.normal(k1, (1, embedding_length), jnp.float32)
    x2 = jax.random.normal(k2, (1, batch_size), jnp.float32)
    x3 = jax.random.normal(k3, (1, batch_size), jnp.float32)
    action = jax.random.uniform(ka, (1,), jnp.float32)   # scalar action

    out = jax.block_until_ready(critic_forward(x1, x2, x3, action, packed))

    # Check against a reference that applies the same bf16 matmul-operand
    # quantization the kernel uses (weights are synthetic, not a checkpoint).
    ref = jax.block_until_ready(
        critic_reference(x1, x2, x3, action, params, matmul_dtype=jnp.bfloat16))
    assert jnp.allclose(out, ref, atol=1e-3, rtol=1e-3), (out, ref)

    # Full-f32 PyTorch-exact reference (bf16 weight quantization drifts ~1e-3;
    # computed for sanity, not asserted at tight tolerance).
    ref_f32 = jax.block_until_ready(
        critic_reference(x1, x2, x3, action, params, matmul_dtype=jnp.float32))
    assert jnp.isfinite(ref_f32)

    print("KERNEL_OK")
</pallas_src>

<mosaic_0001>
module attributes {stable_mosaic.version = 11 : i64} {
  func.func @critic_kernel(%arg0: memref<1x128xf32, #tpu.memory_space<vmem>>, %arg1: memref<384x128xbf16, #tpu.memory_space<vmem>>, %arg2: memref<128x256xbf16, #tpu.memory_space<vmem>>, %arg3: memref<4x384xf32, #tpu.memory_space<vmem>>, %arg4: memref<1x1xf32, #tpu.memory_space<vmem>>) attributes {dimension_semantics = [], scalar_prefetch = 0 : i64, scratch_operands = 0 : i64, tpu.core_type = #tpu.core_type<tc>} {
    %c0 = arith.constant 0 : index
    %c0_0 = arith.constant 0 : index
    %0 = vector.load %arg3[%c0, %c0_0] : memref<4x384xf32, #tpu.memory_space<vmem>>, vector<1x384xf32>
    %c1 = arith.constant 1 : index
    %c0_1 = arith.constant 0 : index
    %1 = vector.load %arg3[%c1, %c0_1] : memref<4x384xf32, #tpu.memory_space<vmem>>, vector<1x384xf32>
    %c2 = arith.constant 2 : index
    %c0_2 = arith.constant 0 : index
    %2 = vector.load %arg3[%c2, %c0_2] : memref<4x384xf32, #tpu.memory_space<vmem>>, vector<1x384xf32>
    %c3 = arith.constant 3 : index
    %c0_3 = arith.constant 0 : index
    %3 = vector.load %arg3[%c3, %c0_3] : memref<4x384xf32, #tpu.memory_space<vmem>>, vector<1x384xf32>
    %c0_4 = arith.constant 0 : index
    %c0_5 = arith.constant 0 : index
    %4 = vector.load %arg0[%c0_4, %c0_5] : memref<1x128xf32, #tpu.memory_space<vmem>>, vector<1x128xf32>
    %5 = arith.truncf %4 : vector<1x128xf32> to vector<1x128xbf16>
    %c0_6 = arith.constant 0 : index
    %c0_7 = arith.constant 0 : index
    %6 = vector.load %arg1[%c0_6, %c0_7] : memref<384x128xbf16, #tpu.memory_space<vmem>>, vector<128x128xbf16>
    %c128 = arith.constant 128 : index
    %c0_8 = arith.constant 0 : index
    %7 = vector.load %arg1[%c128, %c0_8] : memref<384x128xbf16, #tpu.memory_space<vmem>>, vector<256x128xbf16>
    %cst = arith.constant dense<0.000000e+00> : vector<1x128xf32>
    %8 = tpu.matmul %5, %6, %cst {dimension_numbers = #tpu.dot_dimension_numbers<[1], [0], [0], [1], [0, 0, 1, 1], [], []>} : vector<1x128xbf16>, vector<128x128xbf16>, vector<1x128xf32> -> vector<1x128xf32>
    %9 = vector.extract_strided_slice %3 {offsets = [0, 256], sizes = [1, 128], strides = [1, 1]} : vector<1x384xf32> to vector<1x128xf32>
    %10 = arith.addf %8, %9 : vector<1x128xf32>
    %11 = arith.negf %10 : vector<1x128xf32>
    %12 = math.exp %11 : vector<1x128xf32>
    %cst_9 = arith.constant 1.000000e+00 : f32
    %13 = vector.broadcast %cst_9 : f32 to vector<1x128xf32>
    %14 = arith.addf %13, %12 : vector<1x128xf32>
    %15 = arith.divf %13, %14 : vector<1x128xf32>
    %cst_10 = arith.constant 9.99999974E-6 : f32
    %cst_11 = arith.constant 0.999989986 : f32
    %16 = vector.broadcast %cst_10 : f32 to vector<1x128xf32>
    %17 = arith.maximumf %16, %15 : vector<1x128xf32>
    %18 = vector.broadcast %cst_11 : f32 to vector<1x128xf32>
    %19 = arith.minimumf %18, %17 : vector<1x128xf32>
    %20 = arith.truncf %19 : vector<1x128xf32> to vector<1x128xbf16>
    %c0_12 = arith.constant 0 : index
    %c0_13 = arith.constant 0 : index
    %21 = vector.load %arg2[%c0_12, %c0_13] : memref<128x256xbf16, #tpu.memory_space<vmem>>, vector<128x256xbf16>
    %cst_14 = arith.constant dense<0.000000e+00> : vector<1x256xf32>
    %22 = tpu.matmul %20, %21, %cst_14 {dimension_numbers = #tpu.dot_dimension_numbers<[1], [0], [0], [1], [0, 0, 1, 1], [], []>} : vector<1x128xbf16>, vector<128x256xbf16>, vector<1x256xf32> -> vector<1x256xf32>
    %23 = vector.extract_strided_slice %0 {offsets = [0, 0], sizes = [1, 256], strides = [1, 1]} : vector<1x384xf32> to vector<1x256xf32>
    %24 = arith.addf %22, %23 : vector<1x256xf32>
    %25 = vector.extract_strided_slice %1 {offsets = [0, 0], sizes = [1, 256], strides = [1, 1]} : vector<1x384xf32> to vector<1x256xf32>
    %26 = vector.extract_strided_slice %2 {offsets = [0, 0], sizes = [1, 256], strides = [1, 1]} : vector<1x384xf32> to vector<1x256xf32>
    %cst_15 = arith.constant dense<0.000000e+00> : vector<1xf32>
    %27 = vector.multi_reduction <add>, %24, %cst_15 [1] : vector<1x256xf32> to vector<1xf32>
    %28 = vector.shape_cast %27 : vector<1xf32> to vector<1x1xf32>
    %cst_16 = arith.constant 2.560000e+02 : f32
    %29 = vector.broadcast %cst_16 : f32 to vector<1x1xf32>
    %30 = arith.divf %28, %29 : vector<1x1xf32>
    %31 = arith.mulf %24, %24 : vector<1x256xf32>
    %cst_17 = arith.constant dense<0.000000e+00> : vector<1xf32>
    %32 = vector.multi_reduction <add>, %31, %cst_17 [1] : vector<1x256xf32> to vector<1xf32>
    %33 = vector.shape_cast %32 : vector<1xf32> to vector<1x1xf32>
    %cst_18 = arith.constant 2.560000e+02 : f32
    %34 = vector.broadcast %cst_18 : f32 to vector<1x1xf32>
    %35 = arith.divf %33, %34 : vector<1x1xf32>
    %36 = arith.mulf %30, %30 : vector<1x1xf32>
    %37 = arith.subf %35, %36 : vector<1x1xf32>
    %38 = vector.broadcast %30 : vector<1x1xf32> to vector<1x256xf32>
    %39 = arith.subf %24, %38 : vector<1x256xf32>
    %cst_19 = arith.constant 9.99999974E-6 : f32
    %40 = vector.broadcast %cst_19 : f32 to vector<1x1xf32>
    %41 = arith.addf %37, %40 : vector<1x1xf32>
    %42 = math.rsqrt %41 : vector<1x1xf32>
    %43 = vector.broadcast %42 : vector<1x1xf32> to vector<1x256xf32>
    %44 = arith.mulf %39, %43 : vector<1x256xf32>
    %45 = arith.mulf %44, %25 : vector<1x256xf32>
    %46 = arith.addf %45, %26 : vector<1x256xf32>
    %cst_20 = arith.constant 0.000000e+00 : f32
    %47 = vector.broadcast %cst_20 : f32 to vector<1x256xf32>
    %48 = arith.maximumf %46, %47 : vector<1x256xf32>
    %49 = arith.truncf %48 : vector<1x256xf32> to vector<1x256xbf16>
    %cst_21 = arith.constant dense<0.000000e+00> : vector<1x128xf32>
    %50 = tpu.matmul %49, %7, %cst_21 {dimension_numbers = #tpu.dot_dimension_numbers<[1], [0], [0], [1], [0, 0, 1, 1], [], []>} : vector<1x256xbf16>, vector<256x128xbf16>, vector<1x128xf32> -> vector<1x128xf32>
    %51 = vector.extract_strided_slice %0 {offsets = [0, 256], sizes = [1, 128], strides = [1, 1]} : vector<1x384xf32> to vector<1x128xf32>
    %52 = arith.addf %50, %51 : vector<1x128xf32>
    %53 = vector.extract_strided_slice %1 {offsets = [0, 256], sizes = [1, 128], strides = [1, 1]} : vector<1x384xf32> to vector<1x128xf32>
    %54 = vector.extract_strided_slice %2 {offsets = [0, 256], sizes = [1, 128], strides = [1, 1]} : vector<1x384xf32> to vector<1x128xf32>
    %cst_22 = arith.constant dense<0.000000e+00> : vector<1xf32>
    %55 = vector.multi_reduction <add>, %52, %cst_22 [1] : vector<1x128xf32> to vector<1xf32>
    %56 = vector.shape_cast %55 : vector<1xf32> to vector<1x1xf32>
    %cst_23 = arith.constant 1.280000e+02 : f32
    %57 = vector.broadcast %cst_23 : f32 to vector<1x1xf32>
    %58 = arith.divf %56, %57 : vector<1x1xf32>
    %59 = arith.mulf %52, %52 : vector<1x128xf32>
    %cst_24 = arith.constant dense<0.000000e+00> : vector<1xf32>
    %60 = vector.multi_reduction <add>, %59, %cst_24 [1] : vector<1x128xf32> to vector<1xf32>
    %61 = vector.shape_cast %60 : vector<1xf32> to vector<1x1xf32>
    %cst_25 = arith.constant 1.280000e+02 : f32
    %62 = vector.broadcast %cst_25 : f32 to vector<1x1xf32>
    %63 = arith.divf %61, %62 : vector<1x1xf32>
    %64 = arith.mulf %58, %58 : vector<1x1xf32>
    %65 = arith.subf %63, %64 : vector<1x1xf32>
    %66 = vector.broadcast %58 : vector<1x1xf32> to vector<1x128xf32>
    %67 = arith.subf %52, %66 : vector<1x128xf32>
    %cst_26 = arith.constant 9.99999974E-6 : f32
    %68 = vector.broadcast %cst_26 : f32 to vector<1x1xf32>
    %69 = arith.addf %65, %68 : vector<1x1xf32>
    %70 = math.rsqrt %69 : vector<1x1xf32>
    %71 = vector.broadcast %70 : vector<1x1xf32> to vector<1x128xf32>
    %72 = arith.mulf %67, %71 : vector<1x128xf32>
    %73 = arith.mulf %72, %53 : vector<1x128xf32>
    %74 = arith.addf %73, %54 : vector<1x128xf32>
    %cst_27 = arith.constant 0.000000e+00 : f32
    %75 = vector.broadcast %cst_27 : f32 to vector<1x128xf32>
    %76 = arith.maximumf %74, %75 : vector<1x128xf32>
    %77 = vector.extract_strided_slice %3 {offsets = [0, 0], sizes = [1, 128], strides = [1, 1]} : vector<1x384xf32> to vector<1x128xf32>
    %78 = arith.mulf %76, %77 : vector<1x128xf32>
    %cst_28 = arith.constant dense<0.000000e+00> : vector<1xf32>
    %79 = vector.multi_reduction <add>, %78, %cst_28 [1] : vector<1x128xf32> to vector<1xf32>
    %80 = vector.shape_cast %79 : vector<1xf32> to vector<1x1xf32>
    %81 = vector.extract_strided_slice %3 {offsets = [0, 128], sizes = [1, 1], strides = [1, 1]} : vector<1x384xf32> to vector<1x1xf32>
    %82 = arith.addf %80, %81 : vector<1x1xf32>
    %c0_29 = arith.constant 0 : index
    %c0_30 = arith.constant 0 : index
    %83 = vector.load %arg4[%c0_29, %c0_30] : memref<1x1xf32, #tpu.memory_space<vmem>>, vector<1x1xf32>
    tpu.vector_store %arg4[%c0_29, %c0_30], %82 {strides = array<i32>} : memref<1x1xf32, #tpu.memory_space<vmem>>, vector<1x1xf32>,
    return
  }
}

</mosaic_0001>

<bundles_post_ra>
// kernel: critic_forward.1
= control target key start
LH: loop header
LB: loop body
LE: loop exit
PB: predicated region body
PF: predicated region fallthrough
CT: control target
= control target key end

     0   :  { %9 = vsyncpa [#allocation3], 0  ;;  %s993_s0 = inlined_call_operand.vmem [shape: f32[1,128], index: 0, kind: input, shape index: {}]   ;;  %s994_s1 = inlined_call_operand.hbm [shape: bf16[384,128], index: 1, kind: input, shape index: {}]   ;;  %s995_s2 = inlined_call_operand.hbm [shape: bf16[128,256], index: 2, kind: input, shape index: {}]   ;;  %s996_s3 = inlined_call_operand.hbm [shape: f32[4,384], index: 3, kind: input, shape index: {}]   ;;  %s997_s4 = inlined_call_operand.hbm [shape: f32[1,1], index: 4, kind: output, shape index: {}]  }
   0x1   :  { %10 = vsyncpa [#allocation6], 0  ;;  %s31_s17 = sshll.u32 %s995_s2, 4  ;;  %s32_s17 = int_to_ptr.hbm [resolvable:$true] %s31_s17 }
   0x2   :  { %11 = vsyncpa [#allocation4], 0  ;;  %s904_s18 = smov [#allocation5]   ;;  %s18_s22 = sshll.u32 %s994_s1, 4  ;;  %s19_s22 = int_to_ptr.hbm [resolvable:$true] %s18_s22 }
   0x3   :  { %s33_s19 = sshll.u32 %s904_s18, 4  ;;  %s905_s23 = smov 128   ;;  %s34_s19 = int_to_ptr.vmem [resolvable:$true] %s33_s19 }
   0x4   :  { %s906_s24 = smov 8   ;;  %s907_s25 = smov [#allocation2]  }
   0x5   :  { %39 = dma.hbm_to_vmem [thread:$0]  %s32_s17, 2048, %s34_s19, [#allocation6], %s905_s23, %s905_s23, %s906_s24  }
   0x6   :  { %s20_s26 = sshll.u32 %s907_s25, 4  ;;  %s908_s27 = smov 64   ;;  %s21_s26 = int_to_ptr.vmem [resolvable:$true] %s20_s26 }
   0x7   :  { %s909_s28 = smov 4   ;;  %s45_s30 = sshll.u32 %s996_s3, 4  ;;  %s46_s30 = int_to_ptr.hbm [resolvable:$true] %s45_s30 }
   0x8   :  { %26 = dma.hbm_to_vmem [thread:$0]  %s19_s22, 3072, %s21_s26, [#allocation3], %s908_s27, %s908_s27, %s909_s28  }
   0x9   :  { %s910_s5 = smov [#allocation7]  }
   0xa   :  { %s47_s6 = sshll.u32 %s910_s5, 4  ;;  %s48_s6 = int_to_ptr.vmem [resolvable:$true] %s47_s6 }
   0xb   :  { %50 = dma.hbm_to_vmem [thread:$0]  %s46_s30, 192, %s48_s6, [#allocation6]  }
   0xc   :  { %898 = dma.done.wait [#allocation3], 3072  }
   0xd   :  { %899 = vsyncadd [#allocation3], 4294964224 }
   0xe   :  { %900 = dma.done.wait [#allocation6], 2240  }
   0xf   :  { %901 = vsyncadd [#allocation6], 4294965056  ;;  %v747_v0 = vld [vmem:[#allocation2 + $0x38] sm:$0xff]  ;;  %v746_v1 = vld [vmem:[#allocation2 + $0x30] sm:$0xff]  ;;  %vm333_vm4 = vcmask 1040384   ;;  %s568_s10 = sshll.u32 %s997_s4, 4  ;;  %s569_s10 = int_to_ptr.hbm [resolvable:$true] %s568_s10 }
  0x10   :  { %171 = vmatpush.bf16.msra.mxu0 %v747_v0  ;;  %v745_v2 = vld [vmem:[#allocation2 + $0x28] sm:$0xff]  ;;  %v744_v3 = vld [vmem:[#allocation2 + $0x20] sm:$0xff]  ;;  %v743_v4 = vld [vmem:[#allocation2 + $0x18] sm:$0xff]  ;;  %vm559_vm13 = vcmask 0  }
  0x11   :  { %v742_v5 = vld [vmem:[#allocation2 + $0x10] sm:$0xff]  ;;  %v741_v6 = vld [vmem:[#allocation2 + $0x8] sm:$0xff]  ;;  %v740_v7 = vld [vmem:[#allocation2] sm:$0xff] }
  0x12   :  { %v70_v8 = vld [vmem:[%s993_s0] sm:$0x1]  ;;  %v670_v10 = vld [vmem:[#allocation5 + $0x70] sm:$0xf]  ;;  %v779_v11 = vld [vmem:[#allocation5 + $0x74] sm:$0xf0] }
  0x13   :  { %v71_v9 = vpack.c.bf16 %v70_v8, %v70_v8  ;;  %v778_v12 = vld [vmem:[#allocation5 + $0x74] sm:$0xf]  ;;  %v671_v13 = vor.u32 %v779_v11, %v670_v10  ;;  %v672_v14 = vld [vmem:[#allocation5 + $0x78] sm:$0xf0]  ;;  %v662_v16 = vld [vmem:[#allocation5 + $0x60] sm:$0xf] }
  0x14   :  { %172 = vmatpush.bf16.msra.mxu0 %v746_v1  ;;  %v675_v15 = vor.u32 %v778_v12, %v672_v14  ;;  %v777_v17 = vld [vmem:[#allocation5 + $0x64] sm:$0xf0]  ;;  %v776_v18 = vld [vmem:[#allocation5 + $0x64] sm:$0xf]  ;;  %v664_v20 = vld [vmem:[#allocation5 + $0x68] sm:$0xf0] }
  0x15   :  { %307 = vmatpush.bf16.msra.mxu1 %v671_v13  ;;  %v663_v19 = vor.u32 %v777_v17, %v662_v16  ;;  %v667_v21 = vor.u32 %v776_v18, %v664_v20  ;;  %v654_v22 = vld [vmem:[#allocation5 + $0x50] sm:$0xf]  ;;  %v775_v23 = vld [vmem:[#allocation5 + $0x54] sm:$0xf0]  ;;  %v774_v24 = vld [vmem:[#allocation5 + $0x54] sm:$0xf] }
  0x16   :  { %320 = vmatpush.bf16.msra.mxu2 %v675_v15  ;;  %v655_v25 = vor.u32 %v775_v23, %v654_v22  ;;  %v656_v26 = vld [vmem:[#allocation5 + $0x58] sm:$0xf0]  ;;  %v646_v28 = vld [vmem:[#allocation5 + $0x40] sm:$0xf]  ;;  %v773_v29 = vld [vmem:[#allocation5 + $0x44] sm:$0xf0] }
  0x17   :  { %v659_v27 = vor.u32 %v774_v24, %v656_v26  ;;  %v772_v30 = vld [vmem:[#allocation5 + $0x44] sm:$0xf]  ;;  %v647_v31 = vor.u32 %v773_v29, %v646_v28  ;;  %v648_v32 = vld [vmem:[#allocation5 + $0x48] sm:$0xf0]  ;;  %v638_v33 = vld [vmem:[#allocation5 + $0x30] sm:$0xf] }
  0x18   :  { %173 = vmatpush.bf16.msra.mxu0 %v745_v2  ;;  %v771_v34 = vld [vmem:[#allocation5 + $0x34] sm:$0xf0]  ;;  %v651_v35 = vor.u32 %v772_v30, %v648_v32  ;;  %v770_v36 = vld [vmem:[#allocation5 + $0x34] sm:$0xf]  ;;  %v640_v37 = vld [vmem:[#allocation5 + $0x38] sm:$0xf0] }
  0x19   :  { %308 = vmatpush.bf16.msra.mxu1 %v663_v19  ;;  %v639_v38 = vor.u32 %v771_v34, %v638_v33  ;;  %v643_v39 = vor.u32 %v770_v36, %v640_v37  ;;  %v630_v40 = vld [vmem:[#allocation5 + $0x20] sm:$0xf]  ;;  %v769_v41 = vld [vmem:[#allocation5 + $0x24] sm:$0xf0]  ;;  %v768_v42 = vld [vmem:[#allocation5 + $0x24] sm:$0xf] }
  0x1a   :  { %321 = vmatpush.bf16.msra.mxu2 %v667_v21  ;;  %v632_v43 = vld [vmem:[#allocation5 + $0x28] sm:$0xf0]  ;;  %v631_v44 = vor.u32 %v769_v41, %v630_v40  ;;  %v622_v46 = vld [vmem:[#allocation5 + $0x10] sm:$0xf]  ;;  %v767_v47 = vld [vmem:[#allocation5 + $0x14] sm:$0xf0] }
  0x1b   :  { %v635_v45 = vor.u32 %v768_v42, %v632_v43  ;;  %v766_v48 = vld [vmem:[#allocation5 + $0x14] sm:$0xf]  ;;  %v624_v49 = vld [vmem:[#allocation5 + $0x18] sm:$0xf0]  ;;  %v623_v51 = vor.u32 %v767_v47, %v622_v46  ;;  %v614_v53 = vld [vmem:[#allocation5] sm:$0xf] }
  0x1c   :  { %174 = vmatpush.bf16.msra.mxu0 %v744_v3  ;;  %v951_v50 = vld [vmem:[#allocation7 + $0x3] ss:$4 sm:$0x7]  ;;  %v627_v52 = vor.u32 %v766_v48, %v624_v49  ;;  %v616_v56 = vld [vmem:[#allocation5 + $0x8] sm:$0xf0]  ;;  %v911_v32 = vmov 256.0  }
  0x1d   :  { %309 = vmatpush.bf16.msra.mxu1 %v655_v25  ;;  %v765_v54 = vld [vmem:[#allocation5 + $0x4] sm:$0xf0]  ;;  %v764_v55 = vld [vmem:[#allocation5 + $0x4] sm:$0xf]  ;;  %v169_v57 = vperm.slane %v951_v50, 2  ;;  %v755_v33 = vld [vmem:[#allocation2 + $0x78] sm:$0xff] }
  0x1e   :  { %322 = vmatpush.bf16.msra.mxu2 %v659_v27  ;;  %v615_v58 = vor.u32 %v765_v54, %v614_v53  ;;  %v619_v59 = vor.u32 %v764_v55, %v616_v56  ;;  %v954_v15 = vld [vmem:[#allocation7] ss:$4 sm:$0x7]  ;;  %v763_v34 = vld [vmem:[#allocation2 + $0xb8] sm:$0xff]  ;;  %488 = vmatpush.bf16.msra.mxu3 %v755_v33  ;;  %v762_v36 = vld [vmem:[#allocation2 + $0xb0] sm:$0xff]  ;;  %s913_s0 = smov [#allocation8]  }
  0x1f   :  { %v303_v17 = vperm.slane %v954_v15, 0  ;;  %v304_v18 = vperm.slane %v954_v15, 1  ;;  %v761_v40 = vld [vmem:[#allocation2 + $0xa8] sm:$0xff]  ;;  %v752_v42 = vld [vmem:[#allocation2 + $0x60] sm:$0xff]  ;;  %v759_v46 = vld [vmem:[#allocation2 + $0x98] sm:$0xff]  ;;  %s566_s7 = sshll.u32 %s913_s0, 4  ;;  %s567_s7 = int_to_ptr.vmem [resolvable:$true] %s566_s7 }
  0x20   :  { %175 = vmatpush.bf16.msra.mxu0 %v743_v4  ;;  %v760_v43 = vld [vmem:[#allocation2 + $0xa0] sm:$0xff]  ;;  %v750_v47 = vld [vmem:[#allocation2 + $0x50] sm:$0xff]  ;;  %v757_v53 = vld [vmem:[#allocation2 + $0x88] sm:$0xff] }
  0x21   :  { %310 = vmatpush.bf16.msra.mxu1 %v647_v31  ;;  %v758_v48 = vld [vmem:[#allocation2 + $0x90] sm:$0xff]  ;;  %v748_v55 = vld [vmem:[#allocation2 + $0x40] sm:$0xff] }
  0x22   :  { %323 = vmatpush.bf16.msra.mxu2 %v651_v35  ;;  %v754_v35 = vld [vmem:[#allocation2 + $0x70] sm:$0xff]  ;;  %v756_v56 = vld [vmem:[#allocation2 + $0x80] sm:$0xff] }
  0x23   :  { %489 = vmatpush.bf16.msra.mxu3 %v754_v35  ;;  %v912_v35 = vmov 128.0  }
  0x24   :  { %176 = vmatpush.bf16.msra.mxu0 %v742_v5 }
  0x25   :  { %311 = vmatpush.bf16.msra.mxu1 %v639_v38 }
  0x26   :  { %324 = vmatpush.bf16.msra.mxu2 %v643_v39  ;;  %v753_v39 = vld [vmem:[#allocation2 + $0x68] sm:$0xff] }
  0x27   :  { %490 = vmatpush.bf16.msra.mxu3 %v753_v39 }
  0x28   :  { %177 = vmatpush.bf16.msra.mxu0 %v741_v6 }
  0x29   :  { %312 = vmatpush.bf16.msra.mxu1 %v631_v44 }
  0x2a   :  { %325 = vmatpush.bf16.msra.mxu2 %v635_v45  ;;  %v751_v45 = vld [vmem:[#allocation2 + $0x58] sm:$0xff] }
  0x2b   :  { %491 = vmatpush.bf16.msra.mxu3 %v752_v42 }
  0x2c   :  { %178 = vmatpush.bf16.msra.mxu0 %v740_v7 }
  0x2d   :  { %313 = vmatpush.bf16.msra.mxu1 %v623_v51 }
  0x2e   :  { %326 = vmatpush.bf16.msra.mxu2 %v627_v52  ;;  %v749_v52 = vld [vmem:[#allocation2 + $0x48] sm:$0xff] }
  0x2f   :  { %179 = vmatmul.bf16.vlgmr.msra.gmra.mxu0 %v71_v9  ;;  %492 = vmatpush.bf16.msra.mxu3 %v751_v45 }
  0x30   :  { %501 = vmatpush.bf16.msrb.mxu0 %v763_v34 }
  0x31   :  { %314 = vmatpush.bf16.msra.mxu1 %v615_v58 }
  0x32   :  { %327 = vmatpush.bf16.msra.mxu2 %v619_v59 }
  0x33   :  { %493 = vmatpush.bf16.msra.mxu3 %v750_v47 }
  0x34   :  { %502 = vmatpush.bf16.msrb.mxu0 %v762_v36 }
  0x37   :  { %494 = vmatpush.bf16.msra.mxu3 %v749_v52 }
  0x38   :  { %503 = vmatpush.bf16.msrb.mxu0 %v761_v40 }
  0x3b   :  { %495 = vmatpush.bf16.msra.mxu3 %v748_v55 }
  0x3c   :  { %504 = vmatpush.bf16.msrb.mxu0 %v760_v43 }
  0x40   :  { %505 = vmatpush.bf16.msrb.mxu0 %v759_v46 }
  0x44   :  { %506 = vmatpush.bf16.msrb.mxu0 %v758_v48 }
  0x48   :  { %507 = vmatpush.bf16.msrb.mxu0 %v757_v53 }
  0x4c   :  { %508 = vmatpush.bf16.msrb.mxu0 %v756_v56 }
  0xac   :  { %v180_v60 = vpop.f32.mrf.mxu0 }
  0xad   :  { %v181_v61 = vadd.f32 %v180_v60, %v169_v57 }
  0xaf   :  { %v611_v62 = vmul.f32 -1.442695, %v181_v61 }
  0xb1   :  { %790 = vpow2.f32 %v611_v62 }
  0xb4   :  { %v182_v63 = vpop.f32.mrf.mxu0 }
  0xb7   :  { %v791_v0 = vpop.eup %790 }
  0xb8   :  { %v187_v1 = vadd.f32 1.0, %v791_v0 }
  0xba   :  { %792 = vrcp.f32 %v187_v1  ;;  %v199_v5 = vand.u32 2147483648, %v187_v1  ;;  %v197_v7 = vand.u32 2147483647, %v187_v1  ;;  %vm193_vm1 = vweird.f32 %v187_v1 }
  0xbb   :  { %794 = vrcp.f32 %v911_v32 }
  0xbc   :  { %v200_v9 = vor.u32 1.1754944e-38, %v199_v5  ;;  %vm198_vm3 = vcmp.eq.f32.partialorder %v197_v7, 8.507059e+37  ;;  %v974_v5 = vld [vmem:[#allocation7 + $0x2] ss:$4 sm:$0x7] }
  0xc0   :  { %v793_v2 = vpop.eup %792 }
  0xc1   :  { %v189_v3 = vmul.f32 %v793_v2, %v187_v1  ;;  %vm194_vm0 = vweird.f32 %v793_v2  ;;  %v795_v37 = vpop.eup %794 }
  0xc2   :  { %vm195_vm2 = vmor %vm193_vm1, %vm194_vm0  ;;  %v340_v38 = vmul.f32 256.0, %v795_v37  ;;  %vm344_vm5 = vweird.f32 %v795_v37 }
  0xc3   :  { %v190_v4 = vsub.f32 1.0, %v189_v3 }
  0xc4   :  { %v341_v41 = vsub.f32 1.0, %v340_v38 }
  0xc5   :  { %v191_v6 = vmul.f32 %v793_v2, %v190_v4  ;;  %v972_v4 = vld [vmem:[#allocation7 + $0x1] ss:$4 sm:$0x7] }
  0xc6   :  { %v342_v44 = vmul.f32 %v795_v37, %v341_v41  ;;  %v545_v56 = vperm.slane %v972_v4, 2 }
  0xc7   :  { %v192_v8 = vadd.f32 %v793_v2, %v191_v6 }
  0xc8   :  { %v343_v49 = vadd.f32 %v795_v37, %v342_v44 }
  0xc9   :  { %v196_v10 = vsel %vm195_vm2, %v793_v2, %v192_v8 }
  0xca   :  { %v201_v11 = vsel %vm198_vm3, %v200_v9, %v196_v10  ;;  %v345_v54 = vsel %vm344_vm5, %v795_v37, %v343_v49  ;;  %v373_v9 = vperm.slane %v972_v4, 0  ;;  %v374_v10 = vperm.slane %v972_v4, 1 }
  0xcb   :  { %v203_v12 = vmax.f32 %v201_v11, 1e-05 }
  0xcd   :  { %v204_v13 = vmin.f32 %v203_v12, 0.99999 }
  0xcf   :  { %v205_v14 = vpack.c.bf16 %v204_v13, %v204_v13 }
  0xd1   :  { %315 = vmatmul.bf16.vlgmr.msra.gmra.mxu1 %v205_v14  ;;  %328 = vmatmul.bf16.vlgmr.msra.gmra.mxu2 %v205_v14  ;;  %v380_v14 = vperm.slane %v974_v5, 0 }
 0x14e   :  { %v316_v16 = vpop.f32.mrf.mxu1 }
 0x14f   :  { %v958_v19 = vadd.f32 %v316_v16, %v303_v17  ;;  %v381_v16 = vperm.slane %v974_v5, 1 }
 0x151   :  { %v334_v23 = vsel %vm333_vm4, %v958_v19, 0.0  ;;  %v347_v27 = vmul.f32 %v958_v19, %v958_v19 }
 0x153   :  { %v349_v30 = vsel %vm333_vm4, %v347_v27, 0.0 }
 0x154   :  { %v329_v20 = vpop.f32.mrf.mxu2 }
 0x155   :  { %v960_v21 = vadd.f32 %v329_v20, %v304_v18 }
 0x156   :  { %v318_v22 = vpop.f32.mrf.mxu1 }
 0x157   :  { %v335_v24 = vsel %vm333_vm4, %v960_v21, 0.0  ;;  %v348_v26 = vmul.f32 %v960_v21, %v960_v21 }
 0x158   :  { %v336_v25 = vadd.f32 %v335_v24, %v334_v23 }
 0x159   :  { %v350_v29 = vsel %vm333_vm4, %v348_v26, 0.0  ;;  %v486_v26 = vperm.slane %v954_v15, 2 }
 0x15a   :  { %337 = vadd.xlane.f32.xlu0 %v336_v25  ;;  %v351_v31 = vadd.f32 %v350_v29, %v349_v30 }
 0x15c   :  { %v331_v28 = vpop.f32.mrf.mxu2 }
 0x162   :  { %352 = vadd.xlane.f32.xlu0 %v351_v31 }
 0x1cd   :  { %v338_v51 = vpop.xlane.xlu0 %337 }
 0x1ce   :  { %v346_v57 = vmul.f32 %v345_v54, %v338_v51 }
 0x1d0   :  { %v355_v59 = vmul.f32 %v346_v57, %v346_v57  ;;  %v357_v7 = vsub.f32 %v958_v19, %v346_v57  ;;  %v358_v8 = vsub.f32 %v960_v21, %v346_v57 }
 0x1d5   :  { %v353_v58 = vpop.xlane.xlu0 %352 }
 0x1d6   :  { %v354_v60 = vmul.f32 %v353_v58, %v345_v54 }
 0x1d8   :  { %v356_v61 = vsub.f32 %v354_v60, %v355_v59  ;;  %v548_v59 = vperm.slane %v974_v5, 2 }
 0x1da   :  { %v359_v62 = vadd.f32 1e-05, %v356_v61 }
 0x1dc   :  { %796 = vrsqrt.f32 %v359_v62  ;;  %vm366_vm7 = vweird.f32 %v359_v62 }
 0x1dd   :  { %798 = vrcp.f32 %v912_v35 }
 0x1e2   :  { %v797_v63 = vpop.eup %796 }
 0x1e3   :  { %v361_v0 = vmul.f32 %v797_v63, %v359_v62  ;;  %vm367_vm6 = vweird.f32 %v797_v63  ;;  %v799_v36 = vpop.eup %798 }
 0x1e4   :  { %vm368_vm8 = vmor %vm366_vm7, %vm367_vm6  ;;  %v518_v37 = vmul.f32 128.0, %v799_v36  ;;  %vm522_vm9 = vweird.f32 %v799_v36 }
 0x1e5   :  { %v362_v1 = vmul.f32 %v797_v63, %v361_v0 }
 0x1e6   :  { %v519_v38 = vsub.f32 1.0, %v518_v37 }
 0x1e7   :  { %v363_v2 = vmul.f32 0.5, %v362_v1  ;;  %v556_v1 = vperm.slane %v951_v50, 1 }
 0x1e8   :  { %v520_v39 = vmul.f32 %v799_v36, %v519_v38 }
 0x1e9   :  { %v364_v3 = vsub.f32 1.5, %v363_v2 }
 0x1ea   :  { %v521_v40 = vadd.f32 %v799_v36, %v520_v39 }
 0x1eb   :  { %v365_v6 = vmul.f32 %v797_v63, %v364_v3 }
 0x1ec   :  { %v523_v41 = vsel %vm522_vm9, %v799_v36, %v521_v40 }
 0x1ed   :  { %v369_v11 = vsel %vm368_vm8, %v797_v63, %v365_v6 }
 0x1ee   :  { %v370_v12 = vmul.f32 %v369_v11, %v357_v7  ;;  %v371_v13 = vmul.f32 %v369_v11, %v358_v8 }
 0x1f0   :  { %v377_v17 = vmul.f32 %v373_v9, %v370_v12  ;;  %v378_v18 = vmul.f32 %v374_v10, %v371_v13 }
 0x1f2   :  { %v384_v20 = vadd.f32 %v380_v14, %v377_v17  ;;  %v385_v22 = vadd.f32 %v381_v16, %v378_v18 }
 0x1f4   :  { %v386_v23 = vmax.f32 %v384_v20, 0.0  ;;  %v387_v19 = vmax.f32 %v385_v22, 0.0 }
 0x1f6   :  { %v388_v24 = vpack.c.bf16 %v386_v23, %v386_v23  ;;  %v389_v21 = vpack.c.bf16 %v387_v19, %v387_v19 }
 0x1f8   :  { %496 = vmatmul.bf16.vlgmr.msra.gmra.mxu3 %v388_v24  ;;  %509 = vmatmul.bf16.vlgmr.msrb.gmra.mxu0 %v389_v21 }
 0x275   :  { %v510_v25 = vpop.f32.mrf.mxu0 }
 0x27b   :  { %v497_v27 = vpop.f32.mrf.mxu3 }
 0x27c   :  { %v498_v28 = vadd.f32 %v497_v27, %v486_v26 }
 0x27d   :  { %v512_v29 = vpop.f32.mrf.mxu0 }
 0x27e   :  { %v511_v30 = vadd.f32 %v510_v25, %v498_v28 }
 0x280   :  { %v514_v31 = vsel %vm333_vm4, %v511_v30, 0.0  ;;  %v525_v33 = vmul.f32 %v511_v30, %v511_v30 }
 0x281   :  { %515 = vadd.xlane.f32.xlu1 %v514_v31 }
 0x282   :  { %v526_v34 = vsel %vm333_vm4, %v525_v33, 0.0 }
 0x283   :  { %v499_v32 = vpop.f32.mrf.mxu3 }
 0x289   :  { %527 = vadd.xlane.f32.xlu1 %v526_v34 }
 0x2f4   :  { %v516_v15 = vpop.xlane.xlu1 %515 }
 0x2f5   :  { %v524_v42 = vmul.f32 %v523_v41, %v516_v15 }
 0x2f7   :  { %v530_v44 = vmul.f32 %v524_v42, %v524_v42  ;;  %v532_v55 = vsub.f32 %v511_v30, %v524_v42 }
 0x2fc   :  { %v528_v43 = vpop.xlane.xlu1 %527 }
 0x2fd   :  { %v529_v45 = vmul.f32 %v528_v43, %v523_v41 }
 0x2ff   :  { %v531_v46 = vsub.f32 %v529_v45, %v530_v44 }
 0x301   :  { %v533_v47 = vadd.f32 1e-05, %v531_v46 }
 0x303   :  { %800 = vrsqrt.f32 %v533_v47  ;;  %vm540_vm11 = vweird.f32 %v533_v47 }
 0x309   :  { %v801_v48 = vpop.eup %800 }
 0x30a   :  { %v535_v49 = vmul.f32 %v801_v48, %v533_v47  ;;  %vm541_vm10 = vweird.f32 %v801_v48 }
 0x30b   :  { %vm542_vm12 = vmor %vm540_vm11, %vm541_vm10 }
 0x30c   :  { %v536_v51 = vmul.f32 %v801_v48, %v535_v49 }
 0x30e   :  { %v537_v52 = vmul.f32 0.5, %v536_v51 }
 0x310   :  { %v538_v53 = vsub.f32 1.5, %v537_v52 }
 0x312   :  { %v539_v54 = vmul.f32 %v801_v48, %v538_v53 }
 0x314   :  { %v543_v57 = vsel %vm542_vm12, %v801_v48, %v539_v54 }
 0x315   :  { %v544_v58 = vmul.f32 %v543_v57, %v532_v55 }
 0x317   :  { %v547_v60 = vmul.f32 %v545_v56, %v544_v58 }
 0x319   :  { %v550_v61 = vadd.f32 %v548_v59, %v547_v60 }
 0x31b   :  { %v551_v62 = vmax.f32 %v550_v61, 0.0 }
 0x31d   :  { %v552_v63 = vmul.f32 %v551_v62, %v951_v50 }
 0x31f   :  { %v553_v0 = vsel %vm333_vm4, %v552_v63, 0.0 }
 0x320   :  { %554 = vadd.xlane.f32.xlu2 %v553_v0 }
 0x393   :  { %v555_v2 = vpop.xlane.xlu2 %554 }
 0x394   :  { %v558_v3 = vadd.f32 %v556_v1, %v555_v2 }
 0x396   :  { %560 = vst.msk [vmem:[#allocation8] sm:$0x1] %vm559_vm13, %v558_v3 }
 0x397   :  { %571 = dma.vmem_to_hbm [thread:$0]  %s567_s7, 16, %s569_s10, [#allocation4]  }
 0x398   :  { %902 = dma.done.wait [#allocation4], 16  }
 0x399   :  { %903 = vsyncadd [#allocation4], 4294967280 }
 0x39a   :  { %576 = vsyncpa [#allocation3], 1 }
 0x39b   :  { %577 = vsyncpa [#allocation6], 1 }
 0x39c   :  { %578 = vsyncpa [#allocation4], 1 }

</bundles_post_ra>
